<compile_context>
chip_gen: v7x
topology: tpu7x:2x2x1
jax: 0.10.0
libtpu: 0.0.40
codegen_flags: <defaults>
</compile_context>

<pallas_src>
import functools

import jax
import jax.numpy as jnp
from jax.experimental import pallas as pl
from jax.experimental.pallas import tpu as pltpu

LANE = 128  # TPU lane width; pad all feature dims to a multiple of this.


def _round_up(n, m):
    return ((n + m - 1) // m) * m


def _default_batch_tile():
    # MXU-friendly batch tile: 128 rows on v5e (4x128 MXU), 256 on v6e/v7x (2x256 MXU).
    try:
        kind = jax.devices()[0].device_kind.lower()
        if "v5" in kind:
            return 128
    except Exception:
        pass
    return 256


def _elu(x):
    # ELU(alpha=1). Clamp the exp argument so the un-taken branch of jnp.where never
    # overflows to inf for large positive x. (exp-1 kept instead of expm1 for guaranteed
    # Mosaic lowering; difference is far below the tested tolerance.)
    return jnp.where(x > 0, x, jnp.exp(jnp.minimum(x, 0.0)) - 1.0)


def cvae_forward_kernel(
    x_ref, c_ref, eps_ref,
    w1x_ref, w1c_ref, b1_ref,
    w2_ref, b2_ref,
    w3_ref, b3_ref,
    w31_ref, b31_ref,
    w32_ref, b32_ref,
    w4z_ref, w4c_ref, b4_ref,
    w5_ref, b5_ref,
    w6_ref, b6_ref,
    w7_ref, b7_ref,
    recon_ref, mu_ref, logvar_ref,
):
    f32 = jnp.float32
    bf16 = jnp.bfloat16

    x = x_ref[...]      # (TB, Dx_p)  f32
    c = c_ref[...]      # (TB, 1)     f32
    eps = eps_ref[...]  # (TB, L_p)   f32

    # ---- encode: h = ELU(fc3(fc2(fc1([x, c])))) -- single ELU, exactly as the spec ----
    h = jnp.dot(x.astype(bf16), w1x_ref[...], preferred_element_type=f32)
    h = h + c * w1c_ref[...] + b1_ref[...]            # c-column contribution + bias (f32 VPU)
    h = jnp.dot(h.astype(bf16), w2_ref[...], preferred_element_type=f32) + b2_ref[...]
    h = jnp.dot(h.astype(bf16), w3_ref[...], preferred_element_type=f32) + b3_ref[...]
    h = _elu(h)

    hb = h.astype(bf16)
    mu = jnp.dot(hb, w31_ref[...], preferred_element_type=f32) + b31_ref[...]
    logvar = jnp.dot(hb, w32_ref[...], preferred_element_type=f32) + b32_ref[...]
    mu_ref[...] = mu
    logvar_ref[...] = logvar

    # ---- reparameterize: z = mu + eps * exp(0.5 * logvar)  (f32; exp goes to the EUP) ----
    z = mu + eps * jnp.exp(0.5 * logvar)

    # ---- decode: recon = fc7(fc6(fc5(fc4([z, c]))))  -- no activation, as the spec ----
    d = jnp.dot(z.astype(bf16), w4z_ref[...], preferred_element_type=f32)
    d = d + c * w4c_ref[...] + b4_ref[...]
    d = jnp.dot(d.astype(bf16), w5_ref[...], preferred_element_type=f32) + b5_ref[...]
    d = jnp.dot(d.astype(bf16), w6_ref[...], preferred_element_type=f32) + b6_ref[...]
    d = jnp.dot(d.astype(bf16), w7_ref[...], preferred_element_type=f32) + b7_ref[...]
    recon_ref[...] = d


def init_params(key, input_dim, latent_dim):
    """PyTorch-style Linear params, stored (in_features, out_features)."""
    L = latent_dim
    dims = {
        "fc1": (input_dim + 1, 8 * L),
        "fc2": (8 * L, 4 * L),
        "fc3": (4 * L, 2 * L),
        "fc31": (2 * L, L),
        "fc32": (2 * L, L),
        "fc4": (L + 1, 2 * L),
        "fc5": (2 * L, 4 * L),
        "fc6": (4 * L, 8 * L),
        "fc7": (8 * L, input_dim),
    }
    params = {}
    for name, (fan_in, fan_out) in dims.items():
        key, kw, kb = jax.random.split(key, 3)
        bound = 1.0 / (fan_in ** 0.5)
        w = jax.random.uniform(kw, (fan_in, fan_out), jnp.float32, -bound, bound)
        b = jax.random.uniform(kb, (fan_out,), jnp.float32, -bound, bound)
        params[name] = (w, b)
    return params


def prepare_kernel_params(params, input_dim, latent_dim):
    """Split the concat-columns out of fc1/fc4, zero-pad every feature dim to a
    multiple of 128 lanes, and pre-cast matmul weights to bf16 (biases stay f32)."""
    L = latent_dim
    Dxp = _round_up(input_dim, LANE)
    H8p = _round_up(8 * L, LANE)
    H4p = _round_up(4 * L, LANE)
    H2p = _round_up(2 * L, LANE)
    Lp = _round_up(L, LANE)

    def pw(w, rp, cp):  # padded bf16 weight for the MXU
        return jnp.pad(w, ((0, rp - w.shape[0]), (0, cp - w.shape[1]))).astype(jnp.bfloat16)

    def pr(v, cp):      # padded f32 row vector (1, cp) for VPU adds/muls
        v = jnp.asarray(v, jnp.float32).reshape(1, -1)
        return jnp.pad(v, ((0, 0), (0, cp - v.shape[1])))

    w1, b1 = params["fc1"]
    w2, b2 = params["fc2"]
    w3, b3 = params["fc3"]
    w31, b31 = params["fc31"]
    w32, b32 = params["fc32"]
    w4, b4 = params["fc4"]
    w5, b5 = params["fc5"]
    w6, b6 = params["fc6"]
    w7, b7 = params["fc7"]

    return (
        pw(w1[:input_dim], Dxp, H8p), pr(w1[input_dim], H8p), pr(b1, H8p),
        pw(w2, H8p, H4p), pr(b2, H4p),
        pw(w3, H4p, H2p), pr(b3, H2p),
        pw(w31, H2p, Lp), pr(b31, Lp),
        pw(w32, H2p, Lp), pr(b32, Lp),
        pw(w4[:latent_dim], Lp, H2p), pr(w4[latent_dim], H2p), pr(b4, H2p),
        pw(w5, H2p, H4p), pr(b5, H4p),
        pw(w6, H4p, H8p), pr(b6, H8p),
        pw(w7, H8p, Dxp), pr(b7, Dxp),
    )


def cvae_forward(x, c, eps, kparams, input_dim, latent_dim, batch_tile=None):
    """Fused CVAE forward: returns (recon, mu, logvar) exactly like the torch module."""
    B = x.shape[0]
    Dxp = _round_up(input_dim, LANE)
    Lp = _round_up(latent_dim, LANE)

    if batch_tile is None:
        batch_tile = _default_batch_tile()
    TB = min(batch_tile, _round_up(B, 8))   # tile the batch; clamp for tiny batches
    Bp = _round_up(B, TB)

    xp = jnp.pad(x.astype(jnp.float32), ((0, Bp - B), (0, Dxp - input_dim)))
    cp = jnp.pad(c.astype(jnp.float32), ((0, Bp - B), (0, 0)))
    epsp = jnp.pad(eps.astype(jnp.float32), ((0, Bp - B), (0, Lp - latent_dim)))

    grid = (Bp // TB,)

    def batch_spec(cols):
        return pl.BlockSpec((TB, cols), lambda i: (i, 0))

    def resident_spec(shape):
        return pl.BlockSpec(shape, lambda i: (0, 0))   # weights stay resident across tiles

    in_specs = [batch_spec(Dxp), batch_spec(1), batch_spec(Lp)]
    in_specs += [resident_spec(p.shape) for p in kparams]

    out_specs = [batch_spec(Dxp), batch_spec(Lp), batch_spec(Lp)]
    out_shape = [
        jax.ShapeDtypeStruct((Bp, Dxp), jnp.float32),
        jax.ShapeDtypeStruct((Bp, Lp), jnp.float32),
        jax.ShapeDtypeStruct((Bp, Lp), jnp.float32),
    ]

    recon_p, mu_p, logvar_p = pl.pallas_call(
        cvae_forward_kernel,
        grid=grid,
        in_specs=in_specs,
        out_specs=out_specs,
        out_shape=out_shape,
        compiler_params=pltpu.CompilerParams(
            dimension_semantics=("parallel",)),   # shard batch tiles across v7x's 2 TCs
    )(xp, cp, epsp, *kparams)

    return (recon_p[:B, :input_dim],
            mu_p[:B, :latent_dim],
            logvar_p[:B, :latent_dim])


# ---------------- references ----------------

def reference_forward_bf16(x, c, eps, params, input_dim, latent_dim):
    """Mirrors the kernel's numerics (bf16 matmul inputs, f32 accumulate/bias/ELU)."""
    bf16, f32 = jnp.bfloat16, jnp.float32

    def mm(a, w):
        return jnp.dot(a.astype(bf16), w.astype(bf16), preferred_element_type=f32)

    w1, b1 = params["fc1"]
    h = mm(x, w1[:input_dim]) + c * w1[input_dim] + b1
    w2, b2 = params["fc2"]; h = mm(h, w2) + b2
    w3, b3 = params["fc3"]; h = mm(h, w3) + b3
    h = _elu(h)
    w31, b31 = params["fc31"]; mu = mm(h, w31) + b31
    w32, b32 = params["fc32"]; logvar = mm(h, w32) + b32
    z = mu + eps * jnp.exp(0.5 * logvar)
    w4, b4 = params["fc4"]
    d = mm(z, w4[:latent_dim]) + c * w4[latent_dim] + b4
    w5, b5 = params["fc5"]; d = mm(d, w5) + b5
    w6, b6 = params["fc6"]; d = mm(d, w6) + b6
    w7, b7 = params["fc7"]; d = mm(d, w7) + b7
    return d, mu, logvar


def reference_forward_f32(x, c, eps, params):
    """Direct f32 translation of the torch module (semantic reference)."""
    def lin(a, name):
        w, b = params[name]
        return a @ w + b

    xc = jnp.concatenate([x, c], axis=1)
    h = jax.nn.elu(lin(lin(lin(xc, "fc1"), "fc2"), "fc3"))
    mu = lin(h, "fc31")
    logvar = lin(h, "fc32")
    z = mu + eps * jnp.exp(0.5 * logvar)
    zc = jnp.concatenate([z, c], axis=1)
    return lin(lin(lin(lin(zc, "fc4"), "fc5"), "fc6"), "fc7"), mu, logvar


if __name__ == "__main__":
    # Small MNIST-flavoured config: input_dim=32, latent_dim=16, batch=8, class_size=1.
    B, input_dim, latent_dim = 8, 32, 16

    key = jax.random.PRNGKey(0)
    key, kx, kc, ke = jax.random.split(key, 4)
    x = jax.random.normal(kx, (B, input_dim), dtype=jnp.float32)
    c = jax.random.bernoulli(kc, 0.5, (B, 1)).astype(jnp.float32)
    # TODO(synk): eps could be drawn in-kernel via pltpu.prng_seed/stateful_normal; it is
    # passed in (matching torch.randn_like's role) so the reference check is deterministic.
    eps = jax.random.normal(ke, (B, latent_dim), dtype=jnp.float32)

    params = init_params(key, input_dim, latent_dim)
    kparams = prepare_kernel_params(params, input_dim, latent_dim)

    fwd = jax.jit(functools.partial(cvae_forward, input_dim=input_dim, latent_dim=latent_dim))
    recon, mu, logvar = fwd(x, c, eps, kparams)
    jax.block_until_ready((recon, mu, logvar))

    assert recon.shape == (B, input_dim)
    assert mu.shape == (B, latent_dim) and logvar.shape == (B, latent_dim)

    # Exact check against a reference that mirrors the kernel's bf16-matmul numerics.
    r_ref, mu_ref, lv_ref = reference_forward_bf16(x, c, eps, params, input_dim, latent_dim)
    assert jnp.allclose(mu, mu_ref, atol=1e-3, rtol=1e-3)
    assert jnp.allclose(logvar, lv_ref, atol=1e-3, rtol=1e-3)
    assert jnp.allclose(recon, r_ref, atol=1e-3, rtol=1e-3)

    # Loose check against the pure-f32 torch-equivalent semantics (bf16 matmuls add ~0.5% error).
    r32, mu32, lv32 = reference_forward_f32(x, c, eps, params)
    assert jnp.allclose(mu, mu32, atol=2e-2, rtol=2e-2)
    assert jnp.allclose(logvar, lv32, atol=2e-2, rtol=2e-2)
    assert jnp.allclose(recon, r32, atol=2e-2, rtol=2e-2)

    print("KERNEL_OK")
</pallas_src>

<mosaic_0001>
module attributes {stable_mosaic.version = 11 : i64} {
  func.func @cvae_forward_kernel(%arg0: i32, %arg1: memref<8x128xf32, #tpu.memory_space<vmem>>, %arg2: memref<8x1xf32, #tpu.memory_space<vmem>>, %arg3: memref<8x128xf32, #tpu.memory_space<vmem>>, %arg4: memref<128x128xbf16, #tpu.memory_space<vmem>>, %arg5: memref<1x128xf32, #tpu.memory_space<vmem>>, %arg6: memref<1x128xf32, #tpu.memory_space<vmem>>, %arg7: memref<128x128xbf16, #tpu.memory_space<vmem>>, %arg8: memref<1x128xf32, #tpu.memory_space<vmem>>, %arg9: memref<128x128xbf16, #tpu.memory_space<vmem>>, %arg10: memref<1x128xf32, #tpu.memory_space<vmem>>, %arg11: memref<128x128xbf16, #tpu.memory_space<vmem>>, %arg12: memref<1x128xf32, #tpu.memory_space<vmem>>, %arg13: memref<128x128xbf16, #tpu.memory_space<vmem>>, %arg14: memref<1x128xf32, #tpu.memory_space<vmem>>, %arg15: memref<128x128xbf16, #tpu.memory_space<vmem>>, %arg16: memref<1x128xf32, #tpu.memory_space<vmem>>, %arg17: memref<1x128xf32, #tpu.memory_space<vmem>>, %arg18: memref<128x128xbf16, #tpu.memory_space<vmem>>, %arg19: memref<1x128xf32, #tpu.memory_space<vmem>>, %arg20: memref<128x128xbf16, #tpu.memory_space<vmem>>, %arg21: memref<1x128xf32, #tpu.memory_space<vmem>>, %arg22: memref<128x128xbf16, #tpu.memory_space<vmem>>, %arg23: memref<1x128xf32, #tpu.memory_space<vmem>>, %arg24: memref<8x128xf32, #tpu.memory_space<vmem>>, %arg25: memref<8x128xf32, #tpu.memory_space<vmem>>, %arg26: memref<8x128xf32, #tpu.memory_space<vmem>>) attributes {dimension_semantics = [#tpu.dimension_semantics<parallel>], iteration_bounds = array<i64: 1>, scalar_prefetch = 0 : i64, scratch_operands = 0 : i64, tpu.core_type = #tpu.core_type<tc>, window_params = [{transform_indices = @transform_0, window_bounds = array<i64: 8, 128>}, {transform_indices = @transform_1, window_bounds = array<i64: 8, 1>}, {transform_indices = @transform_2, window_bounds = array<i64: 8, 128>}, {pipeline_mode = #tpu.pipeline_mode<synchronous>, transform_indices = @transform_3, window_bounds = array<i64: 128, 128>}, {pipeline_mode = #tpu.pipeline_mode<synchronous>, transform_indices = @transform_4, window_bounds = array<i64: 1, 128>}, {pipeline_mode = #tpu.pipeline_mode<synchronous>, transform_indices = @transform_5, window_bounds = array<i64: 1, 128>}, {pipeline_mode = #tpu.pipeline_mode<synchronous>, transform_indices = @transform_6, window_bounds = array<i64: 128, 128>}, {pipeline_mode = #tpu.pipeline_mode<synchronous>, transform_indices = @transform_7, window_bounds = array<i64: 1, 128>}, {pipeline_mode = #tpu.pipeline_mode<synchronous>, transform_indices = @transform_8, window_bounds = array<i64: 128, 128>}, {pipeline_mode = #tpu.pipeline_mode<synchronous>, transform_indices = @transform_9, window_bounds = array<i64: 1, 128>}, {pipeline_mode = #tpu.pipeline_mode<synchronous>, transform_indices = @transform_10, window_bounds = array<i64: 128, 128>}, {pipeline_mode = #tpu.pipeline_mode<synchronous>, transform_indices = @transform_11, window_bounds = array<i64: 1, 128>}, {pipeline_mode = #tpu.pipeline_mode<synchronous>, transform_indices = @transform_12, window_bounds = array<i64: 128, 128>}, {pipeline_mode = #tpu.pipeline_mode<synchronous>, transform_indices = @transform_13, window_bounds = array<i64: 1, 128>}, {pipeline_mode = #tpu.pipeline_mode<synchronous>, transform_indices = @transform_14, window_bounds = array<i64: 128, 128>}, {pipeline_mode = #tpu.pipeline_mode<synchronous>, transform_indices = @transform_15, window_bounds = array<i64: 1, 128>}, {pipeline_mode = #tpu.pipeline_mode<synchronous>, transform_indices = @transform_16, window_bounds = array<i64: 1, 128>}, {pipeline_mode = #tpu.pipeline_mode<synchronous>, transform_indices = @transform_17, window_bounds = array<i64: 128, 128>}, {pipeline_mode = #tpu.pipeline_mode<synchronous>, transform_indices = @transform_18, window_bounds = array<i64: 1, 128>}, {pipeline_mode = #tpu.pipeline_mode<synchronous>, transform_indices = @transform_19, window_bounds = array<i64: 128, 128>}, {pipeline_mode = #tpu.pipeline_mode<synchronous>, transform_indices = @transform_20, window_bounds = array<i64: 1, 128>}, {pipeline_mode = #tpu.pipeline_mode<synchronous>, transform_indices = @transform_21, window_bounds = array<i64: 128, 128>}, {pipeline_mode = #tpu.pipeline_mode<synchronous>, transform_indices = @transform_22, window_bounds = array<i64: 1, 128>}, {transform_indices = @transform_23, window_bounds = array<i64: 8, 128>}, {transform_indices = @transform_24, window_bounds = array<i64: 8, 128>}, {transform_indices = @transform_25, window_bounds = array<i64: 8, 128>}]} {
    %c0 = arith.constant 0 : index
    %c0_0 = arith.constant 0 : index
    %0 = vector.load %arg1[%c0, %c0_0] : memref<8x128xf32, #tpu.memory_space<vmem>>, vector<8x128xf32>
    %c0_1 = arith.constant 0 : index
    %c0_2 = arith.constant 0 : index
    %1 = vector.load %arg2[%c0_1, %c0_2] : memref<8x1xf32, #tpu.memory_space<vmem>>, vector<8x1xf32>
    %c0_3 = arith.constant 0 : index
    %c0_4 = arith.constant 0 : index
    %2 = vector.load %arg3[%c0_3, %c0_4] : memref<8x128xf32, #tpu.memory_space<vmem>>, vector<8x128xf32>
    %3 = arith.truncf %0 : vector<8x128xf32> to vector<8x128xbf16>
    %c0_5 = arith.constant 0 : index
    %c0_6 = arith.constant 0 : index
    %4 = vector.load %arg4[%c0_5, %c0_6] : memref<128x128xbf16, #tpu.memory_space<vmem>>, vector<128x128xbf16>
    %cst = arith.constant dense<0.000000e+00> : vector<8x128xf32>
    %5 = tpu.matmul %3, %4, %cst {dimension_numbers = #tpu.dot_dimension_numbers<[1], [0], [0], [1], [0, 0, 1, 1], [], []>} : vector<8x128xbf16>, vector<128x128xbf16>, vector<8x128xf32> -> vector<8x128xf32>
    %c0_7 = arith.constant 0 : index
    %c0_8 = arith.constant 0 : index
    %6 = vector.load %arg5[%c0_7, %c0_8] : memref<1x128xf32, #tpu.memory_space<vmem>>, vector<1x128xf32>
    %7 = vector.broadcast %1 : vector<8x1xf32> to vector<8x128xf32>
    %8 = vector.broadcast %6 : vector<1x128xf32> to vector<8x128xf32>
    %9 = arith.mulf %7, %8 : vector<8x128xf32>
    %10 = arith.addf %5, %9 : vector<8x128xf32>
    %c0_9 = arith.constant 0 : index
    %c0_10 = arith.constant 0 : index
    %11 = vector.load %arg6[%c0_9, %c0_10] : memref<1x128xf32, #tpu.memory_space<vmem>>, vector<1x128xf32>
    %12 = vector.broadcast %11 : vector<1x128xf32> to vector<8x128xf32>
    %13 = arith.addf %10, %12 : vector<8x128xf32>
    %14 = arith.truncf %13 : vector<8x128xf32> to vector<8x128xbf16>
    %c0_11 = arith.constant 0 : index
    %c0_12 = arith.constant 0 : index
    %15 = vector.load %arg7[%c0_11, %c0_12] : memref<128x128xbf16, #tpu.memory_space<vmem>>, vector<128x128xbf16>
    %cst_13 = arith.constant dense<0.000000e+00> : vector<8x128xf32>
    %16 = tpu.matmul %14, %15, %cst_13 {dimension_numbers = #tpu.dot_dimension_numbers<[1], [0], [0], [1], [0, 0, 1, 1], [], []>} : vector<8x128xbf16>, vector<128x128xbf16>, vector<8x128xf32> -> vector<8x128xf32>
    %c0_14 = arith.constant 0 : index
    %c0_15 = arith.constant 0 : index
    %17 = vector.load %arg8[%c0_14, %c0_15] : memref<1x128xf32, #tpu.memory_space<vmem>>, vector<1x128xf32>
    %18 = vector.broadcast %17 : vector<1x128xf32> to vector<8x128xf32>
    %19 = arith.addf %16, %18 : vector<8x128xf32>
    %20 = arith.truncf %19 : vector<8x128xf32> to vector<8x128xbf16>
    %c0_16 = arith.constant 0 : index
    %c0_17 = arith.constant 0 : index
    %21 = vector.load %arg9[%c0_16, %c0_17] : memref<128x128xbf16, #tpu.memory_space<vmem>>, vector<128x128xbf16>
    %cst_18 = arith.constant dense<0.000000e+00> : vector<8x128xf32>
    %22 = tpu.matmul %20, %21, %cst_18 {dimension_numbers = #tpu.dot_dimension_numbers<[1], [0], [0], [1], [0, 0, 1, 1], [], []>} : vector<8x128xbf16>, vector<128x128xbf16>, vector<8x128xf32> -> vector<8x128xf32>
    %c0_19 = arith.constant 0 : index
    %c0_20 = arith.constant 0 : index
    %23 = vector.load %arg10[%c0_19, %c0_20] : memref<1x128xf32, #tpu.memory_space<vmem>>, vector<1x128xf32>
    %24 = vector.broadcast %23 : vector<1x128xf32> to vector<8x128xf32>
    %25 = arith.addf %22, %24 : vector<8x128xf32>
    %cst_21 = arith.constant 0.000000e+00 : f32
    %26 = vector.broadcast %cst_21 : f32 to vector<8x128xf32>
    %27 = arith.cmpf ogt, %25, %26 : vector<8x128xf32>
    %cst_22 = arith.constant 0.000000e+00 : f32
    %28 = vector.broadcast %cst_22 : f32 to vector<8x128xf32>
    %29 = arith.minimumf %25, %28 : vector<8x128xf32>
    %30 = math.exp %29 : vector<8x128xf32>
    %cst_23 = arith.constant 1.000000e+00 : f32
    %31 = vector.broadcast %cst_23 : f32 to vector<8x128xf32>
    %32 = arith.subf %30, %31 : vector<8x128xf32>
    %33 = arith.select %27, %25, %32 : vector<8x128xi1>, vector<8x128xf32>
    %34 = arith.truncf %33 : vector<8x128xf32> to vector<8x128xbf16>
    %c0_24 = arith.constant 0 : index
    %c0_25 = arith.constant 0 : index
    %35 = vector.load %arg11[%c0_24, %c0_25] : memref<128x128xbf16, #tpu.memory_space<vmem>>, vector<128x128xbf16>
    %cst_26 = arith.constant dense<0.000000e+00> : vector<8x128xf32>
    %36 = tpu.matmul %34, %35, %cst_26 {dimension_numbers = #tpu.dot_dimension_numbers<[1], [0], [0], [1], [0, 0, 1, 1], [], []>} : vector<8x128xbf16>, vector<128x128xbf16>, vector<8x128xf32> -> vector<8x128xf32>
    %c0_27 = arith.constant 0 : index
    %c0_28 = arith.constant 0 : index
    %37 = vector.load %arg12[%c0_27, %c0_28] : memref<1x128xf32, #tpu.memory_space<vmem>>, vector<1x128xf32>
    %38 = vector.broadcast %37 : vector<1x128xf32> to vector<8x128xf32>
    %39 = arith.addf %36, %38 : vector<8x128xf32>
    %c0_29 = arith.constant 0 : index
    %c0_30 = arith.constant 0 : index
    %40 = vector.load %arg13[%c0_29, %c0_30] : memref<128x128xbf16, #tpu.memory_space<vmem>>, vector<128x128xbf16>
    %cst_31 = arith.constant dense<0.000000e+00> : vector<8x128xf32>
    %41 = tpu.matmul %34, %40, %cst_31 {dimension_numbers = #tpu.dot_dimension_numbers<[1], [0], [0], [1], [0, 0, 1, 1], [], []>} : vector<8x128xbf16>, vector<128x128xbf16>, vector<8x128xf32> -> vector<8x128xf32>
    %c0_32 = arith.constant 0 : index
    %c0_33 = arith.constant 0 : index
    %42 = vector.load %arg14[%c0_32, %c0_33] : memref<1x128xf32, #tpu.memory_space<vmem>>, vector<1x128xf32>
    %43 = vector.broadcast %42 : vector<1x128xf32> to vector<8x128xf32>
    %44 = arith.addf %41, %43 : vector<8x128xf32>
    %c0_34 = arith.constant 0 : index
    %c0_35 = arith.constant 0 : index
    %45 = vector.load %arg25[%c0_34, %c0_35] : memref<8x128xf32, #tpu.memory_space<vmem>>, vector<8x128xf32>
    tpu.vector_store %arg25[%c0_34, %c0_35], %39 {strides = array<i32>} : memref<8x128xf32, #tpu.memory_space<vmem>>, vector<8x128xf32>,
    %c0_36 = arith.constant 0 : index
    %c0_37 = arith.constant 0 : index
    %46 = vector.load %arg26[%c0_36, %c0_37] : memref<8x128xf32, #tpu.memory_space<vmem>>, vector<8x128xf32>
    tpu.vector_store %arg26[%c0_36, %c0_37], %44 {strides = array<i32>} : memref<8x128xf32, #tpu.memory_space<vmem>>, vector<8x128xf32>,
    %cst_38 = arith.constant 5.000000e-01 : f32
    %47 = vector.broadcast %cst_38 : f32 to vector<8x128xf32>
    %48 = arith.mulf %47, %44 : vector<8x128xf32>
    %49 = math.exp %48 : vector<8x128xf32>
    %50 = arith.mulf %2, %49 : vector<8x128xf32>
    %51 = arith.addf %39, %50 : vector<8x128xf32>
    %52 = arith.truncf %51 : vector<8x128xf32> to vector<8x128xbf16>
    %c0_39 = arith.constant 0 : index
    %c0_40 = arith.constant 0 : index
    %53 = vector.load %arg15[%c0_39, %c0_40] : memref<128x128xbf16, #tpu.memory_space<vmem>>, vector<128x128xbf16>
    %cst_41 = arith.constant dense<0.000000e+00> : vector<8x128xf32>
    %54 = tpu.matmul %52, %53, %cst_41 {dimension_numbers = #tpu.dot_dimension_numbers<[1], [0], [0], [1], [0, 0, 1, 1], [], []>} : vector<8x128xbf16>, vector<128x128xbf16>, vector<8x128xf32> -> vector<8x128xf32>
    %c0_42 = arith.constant 0 : index
    %c0_43 = arith.constant 0 : index
    %55 = vector.load %arg16[%c0_42, %c0_43] : memref<1x128xf32, #tpu.memory_space<vmem>>, vector<1x128xf32>
    %56 = vector.broadcast %1 : vector<8x1xf32> to vector<8x128xf32>
    %57 = vector.broadcast %55 : vector<1x128xf32> to vector<8x128xf32>
    %58 = arith.mulf %56, %57 : vector<8x128xf32>
    %59 = arith.addf %54, %58 : vector<8x128xf32>
    %c0_44 = arith.constant 0 : index
    %c0_45 = arith.constant 0 : index
    %60 = vector.load %arg17[%c0_44, %c0_45] : memref<1x128xf32, #tpu.memory_space<vmem>>, vector<1x128xf32>
    %61 = vector.broadcast %60 : vector<1x128xf32> to vector<8x128xf32>
    %62 = arith.addf %59, %61 : vector<8x128xf32>
    %63 = arith.truncf %62 : vector<8x128xf32> to vector<8x128xbf16>
    %c0_46 = arith.constant 0 : index
    %c0_47 = arith.constant 0 : index
    %64 = vector.load %arg18[%c0_46, %c0_47] : memref<128x128xbf16, #tpu.memory_space<vmem>>, vector<128x128xbf16>
    %cst_48 = arith.constant dense<0.000000e+00> : vector<8x128xf32>
    %65 = tpu.matmul %63, %64, %cst_48 {dimension_numbers = #tpu.dot_dimension_numbers<[1], [0], [0], [1], [0, 0, 1, 1], [], []>} : vector<8x128xbf16>, vector<128x128xbf16>, vector<8x128xf32> -> vector<8x128xf32>
    %c0_49 = arith.constant 0 : index
    %c0_50 = arith.constant 0 : index
    %66 = vector.load %arg19[%c0_49, %c0_50] : memref<1x128xf32, #tpu.memory_space<vmem>>, vector<1x128xf32>
    %67 = vector.broadcast %66 : vector<1x128xf32> to vector<8x128xf32>
    %68 = arith.addf %65, %67 : vector<8x128xf32>
    %69 = arith.truncf %68 : vector<8x128xf32> to vector<8x128xbf16>
    %c0_51 = arith.constant 0 : index
    %c0_52 = arith.constant 0 : index
    %70 = vector.load %arg20[%c0_51, %c0_52] : memref<128x128xbf16, #tpu.memory_space<vmem>>, vector<128x128xbf16>
    %cst_53 = arith.constant dense<0.000000e+00> : vector<8x128xf32>
    %71 = tpu.matmul %69, %70, %cst_53 {dimension_numbers = #tpu.dot_dimension_numbers<[1], [0], [0], [1], [0, 0, 1, 1], [], []>} : vector<8x128xbf16>, vector<128x128xbf16>, vector<8x128xf32> -> vector<8x128xf32>
    %c0_54 = arith.constant 0 : index
    %c0_55 = arith.constant 0 : index
    %72 = vector.load %arg21[%c0_54, %c0_55] : memref<1x128xf32, #tpu.memory_space<vmem>>, vector<1x128xf32>
    %73 = vector.broadcast %72 : vector<1x128xf32> to vector<8x128xf32>
    %74 = arith.addf %71, %73 : vector<8x128xf32>
    %75 = arith.truncf %74 : vector<8x128xf32> to vector<8x128xbf16>
    %c0_56 = arith.constant 0 : index
    %c0_57 = arith.constant 0 : index
    %76 = vector.load %arg22[%c0_56, %c0_57] : memref<128x128xbf16, #tpu.memory_space<vmem>>, vector<128x128xbf16>
    %cst_58 = arith.constant dense<0.000000e+00> : vector<8x128xf32>
    %77 = tpu.matmul %75, %76, %cst_58 {dimension_numbers = #tpu.dot_dimension_numbers<[1], [0], [0], [1], [0, 0, 1, 1], [], []>} : vector<8x128xbf16>, vector<128x128xbf16>, vector<8x128xf32> -> vector<8x128xf32>
    %c0_59 = arith.constant 0 : index
    %c0_60 = arith.constant 0 : index
    %78 = vector.load %arg23[%c0_59, %c0_60] : memref<1x128xf32, #tpu.memory_space<vmem>>, vector<1x128xf32>
    %79 = vector.broadcast %78 : vector<1x128xf32> to vector<8x128xf32>
    %80 = arith.addf %77, %79 : vector<8x128xf32>
    %c0_61 = arith.constant 0 : index
    %c0_62 = arith.constant 0 : index
    %81 = vector.load %arg24[%c0_61, %c0_62] : memref<8x128xf32, #tpu.memory_space<vmem>>, vector<8x128xf32>
    tpu.vector_store %arg24[%c0_61, %c0_62], %80 {strides = array<i32>} : memref<8x128xf32, #tpu.memory_space<vmem>>, vector<8x128xf32>,
    return
  }
  func.func @transform_0(%arg0: i32) -> (i32, i32) {
    %c0_i32 = arith.constant 0 : i32
    %c0_i32_0 = arith.constant 0 : i32
    return %arg0, %c0_i32 : i32, i32
  }
  func.func @transform_1(%arg0: i32) -> (i32, i32) {
    %c0_i32 = arith.constant 0 : i32
    %c0_i32_0 = arith.constant 0 : i32
    return %arg0, %c0_i32 : i32, i32
  }
  func.func @transform_2(%arg0: i32) -> (i32, i32) {
    %c0_i32 = arith.constant 0 : i32
    %c0_i32_0 = arith.constant 0 : i32
    return %arg0, %c0_i32 : i32, i32
  }
  func.func @transform_3(%arg0: i32) -> (i32, i32) {
    %c0_i32 = arith.constant 0 : i32
    %c0_i32_0 = arith.constant 0 : i32
    %c0_i32_1 = arith.constant 0 : i32
    return %c0_i32, %c0_i32_0 : i32, i32
  }
  func.func @transform_4(%arg0: i32) -> (i32, i32) {
    %c0_i32 = arith.constant 0 : i32
    %c0_i32_0 = arith.constant 0 : i32
    %c0_i32_1 = arith.constant 0 : i32
    return %c0_i32, %c0_i32_0 : i32, i32
  }
  func.func @transform_5(%arg0: i32) -> (i32, i32) {
    %c0_i32 = arith.constant 0 : i32
    %c0_i32_0 = arith.constant 0 : i32
    %c0_i32_1 = arith.constant 0 : i32
    return %c0_i32, %c0_i32_0 : i32, i32
  }
  func.func @transform_6(%arg0: i32) -> (i32, i32) {
    %c0_i32 = arith.constant 0 : i32
    %c0_i32_0 = arith.constant 0 : i32
    %c0_i32_1 = arith.constant 0 : i32
    return %c0_i32, %c0_i32_0 : i32, i32
  }
  func.func @transform_7(%arg0: i32) -> (i32, i32) {
    %c0_i32 = arith.constant 0 : i32
    %c0_i32_0 = arith.constant 0 : i32
    %c0_i32_1 = arith.constant 0 : i32
    return %c0_i32, %c0_i32_0 : i32, i32
  }
  func.func @transform_8(%arg0: i32) -> (i32, i32) {
    %c0_i32 = arith.constant 0 : i32
    %c0_i32_0 = arith.constant 0 : i32
    %c0_i32_1 = arith.constant 0 : i32
    return %c0_i32, %c0_i32_0 : i32, i32
  }
  func.func @transform_9(%arg0: i32) -> (i32, i32) {
    %c0_i32 = arith.constant 0 : i32
    %c0_i32_0 = arith.constant 0 : i32
    %c0_i32_1 = arith.constant 0 : i32
    return %c0_i32, %c0_i32_0 : i32, i32
  }
  func.func @transform_10(%arg0: i32) -> (i32, i32) {
    %c0_i32 = arith.constant 0 : i32
    %c0_i32_0 = arith.constant 0 : i32
    %c0_i32_1 = arith.constant 0 : i32
    return %c0_i32, %c0_i32_0 : i32, i32
  }
  func.func @transform_11(%arg0: i32) -> (i32, i32) {
    %c0_i32 = arith.constant 0 : i32
    %c0_i32_0 = arith.constant 0 : i32
    %c0_i32_1 = arith.constant 0 : i32
    return %c0_i32, %c0_i32_0 : i32, i32
  }
  func.func @transform_12(%arg0: i32) -> (i32, i32) {
    %c0_i32 = arith.constant 0 : i32
    %c0_i32_0 = arith.constant 0 : i32
    %c0_i32_1 = arith.constant 0 : i32
    return %c0_i32, %c0_i32_0 : i32, i32
  }
  func.func @transform_13(%arg0: i32) -> (i32, i32) {
    %c0_i32 = arith.constant 0 : i32
    %c0_i32_0 = arith.constant 0 : i32
    %c0_i32_1 = arith.constant 0 : i32
    return %c0_i32, %c0_i32_0 : i32, i32
  }
  func.func @transform_14(%arg0: i32) -> (i32, i32) {
    %c0_i32 = arith.constant 0 : i32
    %c0_i32_0 = arith.constant 0 : i32
    %c0_i32_1 = arith.constant 0 : i32
    return %c0_i32, %c0_i32_0 : i32, i32
  }
  func.func @transform_15(%arg0: i32) -> (i32, i32) {
    %c0_i32 = arith.constant 0 : i32
    %c0_i32_0 = arith.constant 0 : i32
    %c0_i32_1 = arith.constant 0 : i32
    return %c0_i32, %c0_i32_0 : i32, i32
  }
  func.func @transform_16(%arg0: i32) -> (i32, i32) {
    %c0_i32 = arith.constant 0 : i32
    %c0_i32_0 = arith.constant 0 : i32
    %c0_i32_1 = arith.constant 0 : i32
    return %c0_i32, %c0_i32_0 : i32, i32
  }
  func.func @transform_17(%arg0: i32) -> (i32, i32) {
    %c0_i32 = arith.constant 0 : i32
    %c0_i32_0 = arith.constant 0 : i32
    %c0_i32_1 = arith.constant 0 : i32
    return %c0_i32, %c0_i32_0 : i32, i32
  }
  func.func @transform_18(%arg0: i32) -> (i32, i32) {
    %c0_i32 = arith.constant 0 : i32
    %c0_i32_0 = arith.constant 0 : i32
    %c0_i32_1 = arith.constant 0 : i32
    return %c0_i32, %c0_i32_0 : i32, i32
  }
  func.func @transform_19(%arg0: i32) -> (i32, i32) {
    %c0_i32 = arith.constant 0 : i32
    %c0_i32_0 = arith.constant 0 : i32
    %c0_i32_1 = arith.constant 0 : i32
    return %c0_i32, %c0_i32_0 : i32, i32
  }
  func.func @transform_20(%arg0: i32) -> (i32, i32) {
    %c0_i32 = arith.constant 0 : i32
    %c0_i32_0 = arith.constant 0 : i32
    %c0_i32_1 = arith.constant 0 : i32
    return %c0_i32, %c0_i32_0 : i32, i32
  }
  func.func @transform_21(%arg0: i32) -> (i32, i32) {
    %c0_i32 = arith.constant 0 : i32
    %c0_i32_0 = arith.constant 0 : i32
    %c0_i32_1 = arith.constant 0 : i32
    return %c0_i32, %c0_i32_0 : i32, i32
  }
  func.func @transform_22(%arg0: i32) -> (i32, i32) {
    %c0_i32 = arith.constant 0 : i32
    %c0_i32_0 = arith.constant 0 : i32
    %c0_i32_1 = arith.constant 0 : i32
    return %c0_i32, %c0_i32_0 : i32, i32
  }
  func.func @transform_23(%arg0: i32) -> (i32, i32) {
    %c0_i32 = arith.constant 0 : i32
    %c0_i32_0 = arith.constant 0 : i32
    return %arg0, %c0_i32 : i32, i32
  }
  func.func @transform_24(%arg0: i32) -> (i32, i32) {
    %c0_i32 = arith.constant 0 : i32
    %c0_i32_0 = arith.constant 0 : i32
    return %arg0, %c0_i32 : i32, i32
  }
  func.func @transform_25(%arg0: i32) -> (i32, i32) {
    %c0_i32 = arith.constant 0 : i32
    %c0_i32_0 = arith.constant 0 : i32
    return %arg0, %c0_i32 : i32, i32
  }
}

</mosaic_0001>

<bundles_post_ra>
// kernel: cvae_forward.1
= control target key start
LH: loop header
LB: loop body
LE: loop exit
PB: predicated region body
PF: predicated region fallthrough
CT: control target
= control target key end

     0   :  { %s2482_s0 = inlined_call_operand.vmem [shape: f32[8,128], index: 0, kind: input, shape index: {}]   ;;  %s2483_s1 = inlined_call_operand.vmem [shape: f32[8,1], index: 1, kind: input, shape index: {}]   ;;  %s2484_s2 = inlined_call_operand.vmem [shape: f32[8,128], index: 2, kind: input, shape index: {}]   ;;  %s2485_s3 = inlined_call_operand.hbm [shape: bf16[128,128], index: 3, kind: input, shape index: {}]   ;;  %s2486_s4 = inlined_call_operand.vmem [shape: f32[1,128], index: 4, kind: input, shape index: {}]   ;;  %s2487_s5 = inlined_call_operand.hbm [shape: f32[1,128], index: 5, kind: input, shape index: {}]   ;;  %s2488_s6 = inlined_call_operand.vmem [shape: bf16[128,128], index: 6, kind: input, shape index: {}]   ;;  %s2489_s7 = inlined_call_operand.vmem [shape: f32[1,128], index: 7, kind: input, shape index: {}]   ;;  %s2490_s8 = inlined_call_operand.hbm [shape: bf16[128,128], index: 8, kind: input, shape index: {}]   ;;  %s2491_s9 = inlined_call_operand.vmem [shape: f32[1,128], index: 9, kind: input, shape index: {}]   ;;  %s2492_s10 = inlined_call_operand.hbm [shape: bf16[128,128], index: 10, kind: input, shape index: {}]   ;;  %s2493_s11 = inlined_call_operand.vmem [shape: f32[1,128], index: 11, kind: input, shape index: {}]   ;;  %s2494_s12 = inlined_call_operand.hbm [shape: bf16[128,128], index: 12, kind: input, shape index: {}]   ;;  %s2495_s13 = inlined_call_operand.vmem [shape: f32[1,128], index: 13, kind: input, shape index: {}]   ;;  %s2496_s14 = inlined_call_operand.hbm [shape: bf16[128,128], index: 14, kind: input, shape index: {}]   ;;  %s2497_s15 = inlined_call_operand.vmem [shape: f32[1,128], index: 15, kind: input, shape index: {}]   ;;  %s2498_s16 = inlined_call_operand.vmem [shape: f32[1,128], index: 16, kind: input, shape index: {}]   ;;  %s2499_s17 = inlined_call_operand.hbm [shape: bf16[128,128], index: 17, kind: input, shape index: {}]   ;;  %s2500_s18 = inlined_call_operand.vmem [shape: f32[1,128], index: 18, kind: input, shape index: {}]   ;;  %s2501_s19 = inlined_call_operand.hbm [shape: bf16[128,128], index: 19, kind: input, shape index: {}]   ;;  %s2502_s20 = inlined_call_operand.vmem [shape: f32[1,128], index: 20, kind: input, shape index: {}]   ;;  %s2503_s21 = inlined_call_operand.hbm [shape: bf16[128,128], index: 21, kind: input, shape index: {}]   ;;  %s2504_s22 = inlined_call_operand.vmem [shape: f32[1,128], index: 22, kind: input, shape index: {}]   ;;  %s2505_s23 = inlined_call_operand.hbm [shape: f32[8,128], index: 23, kind: output, shape index: {0}]   ;;  %s2506_s24 = inlined_call_operand.hbm [shape: f32[8,128], index: 24, kind: output, shape index: {1}]   ;;  %s2507_s25 = inlined_call_operand.hbm [shape: f32[8,128], index: 25, kind: output, shape index: {2}]  }
   0x1   :  { %2512 = sst [smem:[#allocation28_spill]] %s2482_s0 }
   0x2   :  { %2513 = sst [smem:[#allocation29_spill]] %s2483_s1 }
   0x3   :  { %2514 = sst [smem:[#allocation30_spill]] %s2484_s2 }
   0x4   :  { %2515 = sst [smem:[#allocation31_spill]] %s2485_s3 }
   0x5   :  { %2516 = sst [smem:[#allocation32_spill]] %s2486_s4 }
   0x6   :  { %2517 = sst [smem:[#allocation33_spill]] %s2487_s5 }
   0x7   :  { %2518 = sst [smem:[#allocation34_spill]] %s2488_s6 }
   0x8   :  { %2519 = sst [smem:[#allocation35_spill]] %s2489_s7 }
   0x9   :  { %2520 = sst [smem:[#allocation36_spill]] %s2490_s8 }
   0xa   :  { %2521 = sst [smem:[#allocation37_spill]] %s2491_s9 }
   0xb   :  { %31 = vsyncpa [#allocation3], 0 }
   0xc   :  { %32 = vsyncpa [#allocation6], 0 }
   0xd   :  { %33 = vsyncpa [#allocation9], 0 }
   0xe   :  { %34 = vsyncpa [#allocation12], 0 }
   0xf   :  { %35 = vsyncpa [#allocation15], 0 }
  0x10   :  { %36 = vsyncpa [#allocation4], 0 }
  0x11   :  { %37 = vsyncpa [#allocation19], 0  ;;  %s2010_s29 = smov [#allocation5]   ;;  %s2522_s7 = sld [smem:[#allocation33_spill]] }
  0x12   :  { %s64_s2 = sshll.u32 %s2010_s29, 4  ;;  %s65_s2 = int_to_ptr.vmem [resolvable:$true] %s64_s2 }
  0x17   :  { %s1732_s3 = scalar_lea.hbm %s2522_s7, 16 }
  0x18   :  { %p1733_p0 = scmp.ne.s32.totalorder %s2522_s7, %s1732_s3  ;;  %p1736_p1 = scmp.lt.u32.totalorder %s1732_s3, %s2522_s7 }
  0x1a   :  { %p1738_p2 = pnand %p1736_p1, %p1733_p0 }
  0x1c   :  { %1741 = shalt.err (!%p1738_p2)
}
  0x1d   :  { %s1742_s4 = scalar_lea.vmem %s65_s2, 16  ;;  %s1746_s28 = scalar_lea.vmem %s65_s2, 32 }
  0x1e   :  { %p1743_p3 = scmp.ne.s32.totalorder %s65_s2, %s1742_s4  ;;  %p1747_p4 = scmp.lt.s32.totalorder %s65_s2, %s65_s2 }
  0x1f   :  { %p1748_p5 = scmp.lt.s32.totalorder %s1746_s28, %s1742_s4 }
  0x21   :  { %p1749_p6 = por %p1748_p5, %p1747_p4 }
  0x23   :  { %p1750_p7 = pnand %p1749_p6, %p1743_p3 }
  0x25   :  { %1753 = shalt.err (!%p1750_p7)
}
  0x26   :  { %67 = dma.hbm_to_vmem [thread:$0]  %s2522_s7, 16, %s65_s2, [#allocation6]  }
  0x27   :  { %s2011_s0 = smov [#allocation8]   ;;  %s2012_s6 = smov [#allocation11]  }
  0x28   :  { %s91_s29 = sshll.u32 %s2011_s0, 4  ;;  %s119_s30 = sshll.u32 %s2012_s6, 4  ;;  %s92_s29 = int_to_ptr.vmem [resolvable:$true] %s91_s29  ;;  %s120_s30 = int_to_ptr.vmem [resolvable:$true] %s119_s30 }
  0x29   :  { %s1754_s1 = scalar_lea.hbm %s2492_s10, 1024 }
  0x2a   :  { %p1755_p8 = scmp.ne.s32.totalorder %s2492_s10, %s1754_s1  ;;  %p1758_p9 = scmp.lt.u32.totalorder %s1754_s1, %s2492_s10 }
  0x2c   :  { %p1760_p10 = pnand %p1758_p9, %p1755_p8 }
  0x2e   :  { %1763 = shalt.err (!%p1760_p10)
}
  0x2f   :  { %s1764_s2 = scalar_lea.vmem %s92_s29, 1024  ;;  %p1769_p12 = scmp.lt.s32.totalorder %s92_s29, %s92_s29 }
  0x30   :  { %p1765_p11 = scmp.ne.s32.totalorder %s92_s29, %s1764_s2  ;;  %p1770_p13 = scmp.lt.s32.totalorder %s1764_s2, %s1764_s2 }
  0x32   :  { %p1771_p0 = por %p1770_p13, %p1769_p12 }
  0x34   :  { %p1772_p1 = pnand %p1771_p0, %p1765_p11 }
  0x36   :  { %1775 = shalt.err (!%p1772_p1)
}
  0x37   :  { %s2013_s7 = smov 64   ;;  %s2014_s9 = smov 4  }
  0x38   :  { %97 = dma.hbm_to_vmem [thread:$0]  %s2492_s10, 1024, %s92_s29, [#allocation9], %s2013_s7, %s2013_s7, %s2014_s9  }
  0x39   :  { %s1776_s26 = scalar_lea.hbm %s2496_s14, 1024 }
  0x3a   :  { %p1777_p2 = scmp.ne.s32.totalorder %s2496_s14, %s1776_s26  ;;  %p1780_p3 = scmp.lt.u32.totalorder %s1776_s26, %s2496_s14 }
  0x3c   :  { %p1782_p4 = pnand %p1780_p3, %p1777_p2 }
  0x3e   :  { %1785 = shalt.err (!%p1782_p4)
}
  0x3f   :  { %s1786_s28 = scalar_lea.vmem %s120_s30, 1024  ;;  %p1791_p6 = scmp.lt.s32.totalorder %s120_s30, %s120_s30 }
  0x40   :  { %p1787_p5 = scmp.ne.s32.totalorder %s120_s30, %s1786_s28  ;;  %p1792_p7 = scmp.lt.s32.totalorder %s1786_s28, %s1786_s28 }
  0x42   :  { %p1793_p8 = por %p1792_p7, %p1791_p6 }
  0x44   :  { %p1794_p9 = pnand %p1793_p8, %p1787_p5 }
  0x46   :  { %1797 = shalt.err (!%p1794_p9)
}
  0x47   :  { %125 = dma.hbm_to_vmem [thread:$0]  %s2496_s14, 1024, %s120_s30, [#allocation12], %s2013_s7, %s2013_s7, %s2014_s9  }
  0x48   :  { %s2015_s2 = smov [#allocation14]   ;;  %s2016_s0 = smov [#allocation2]  }
  0x49   :  { %s149_s5 = sshll.u32 %s2015_s2, 4  ;;  %s49_s6 = sshll.u32 %s2016_s0, 4  ;;  %s150_s5 = int_to_ptr.vmem [resolvable:$true] %s149_s5  ;;  %s50_s6 = int_to_ptr.vmem [resolvable:$true] %s49_s6 }
  0x4a   :  { %s1798_s1 = scalar_lea.hbm %s2501_s19, 1024 }
  0x4b   :  { %p1799_p10 = scmp.ne.s32.totalorder %s2501_s19, %s1798_s1  ;;  %p1802_p11 = scmp.lt.u32.totalorder %s1798_s1, %s2501_s19 }
  0x4d   :  { %p1804_p12 = pnand %p1802_p11, %p1799_p10 }
  0x4f   :  { %1807 = shalt.err (!%p1804_p12)
}
  0x50   :  { %s1808_s14 = scalar_lea.vmem %s150_s5, 1024  ;;  %p1813_p0 = scmp.lt.s32.totalorder %s150_s5, %s150_s5 }
  0x51   :  { %p1809_p13 = scmp.ne.s32.totalorder %s150_s5, %s1808_s14  ;;  %p1814_p1 = scmp.lt.s32.totalorder %s1808_s14, %s1808_s14 }
  0x53   :  { %p1815_p2 = por %p1814_p1, %p1813_p0 }
  0x55   :  { %p1816_p3 = pnand %p1815_p2, %p1809_p13 }
  0x57   :  { %1819 = shalt.err (!%p1816_p3)
}
  0x58   :  { %155 = dma.hbm_to_vmem [thread:$0]  %s2501_s19, 1024, %s150_s5, [#allocation15], %s2013_s7, %s2013_s7, %s2014_s9  }
  0x59   :  { %s2523_s0 = sld [smem:[#allocation31_spill]] }
  0x5f   :  { %s1820_s3 = scalar_lea.hbm %s2523_s0, 1024 }
  0x60   :  { %p1821_p4 = scmp.ne.s32.totalorder %s2523_s0, %s1820_s3  ;;  %p1824_p5 = scmp.lt.u32.totalorder %s1820_s3, %s2523_s0 }
  0x62   :  { %p1826_p6 = pnand %p1824_p5, %p1821_p4 }
  0x64   :  { %1829 = shalt.err (!%p1826_p6)
}
  0x65   :  { %s1830_s4 = scalar_lea.vmem %s50_s6, 1024  ;;  %p1835_p8 = scmp.lt.s32.totalorder %s50_s6, %s50_s6 }
  0x66   :  { %p1831_p7 = scmp.ne.s32.totalorder %s50_s6, %s1830_s4  ;;  %p1836_p9 = scmp.lt.s32.totalorder %s1830_s4, %s1830_s4 }
  0x68   :  { %p1837_p10 = por %p1836_p9, %p1835_p8 }
  0x6a   :  { %p1838_p11 = pnand %p1837_p10, %p1831_p7 }
  0x6c   :  { %1841 = shalt.err (!%p1838_p11)
}
  0x6d   :  { %55 = dma.hbm_to_vmem [thread:$0]  %s2523_s0, 1024, %s50_s6, [#allocation3], %s2013_s7, %s2013_s7, %s2014_s9  }
  0x6e   :  { %s2017_s28 = smov [#allocation7]   ;;  %s2018_s30 = smov [#allocation10]  }
  0x6f   :  { %s77_s14 = sshll.u32 %s2017_s28, 4  ;;  %s105_s10 = sshll.u32 %s2018_s30, 4  ;;  %s78_s14 = int_to_ptr.vmem [resolvable:$true] %s77_s14  ;;  %s106_s10 = int_to_ptr.vmem [resolvable:$true] %s105_s10 }
  0x70   :  { %s2524_s3 = sld [smem:[#allocation36_spill]] }
  0x76   :  { %s1842_s26 = scalar_lea.hbm %s2524_s3, 1024 }
  0x77   :  { %p1843_p12 = scmp.ne.s32.totalorder %s2524_s3, %s1842_s26  ;;  %p1846_p13 = scmp.lt.u32.totalorder %s1842_s26, %s2524_s3 }
  0x79   :  { %p1848_p0 = pnand %p1846_p13, %p1843_p12 }
  0x7b   :  { %1851 = shalt.err (!%p1848_p0)
}
  0x7c   :  { %s1852_s6 = scalar_lea.vmem %s78_s14, 1024  ;;  %p1857_p2 = scmp.lt.s32.totalorder %s78_s14, %s78_s14 }
  0x7d   :  { %p1853_p1 = scmp.ne.s32.totalorder %s78_s14, %s1852_s6  ;;  %p1858_p3 = scmp.lt.s32.totalorder %s1852_s6, %s1852_s6 }
  0x7f   :  { %p1859_p4 = por %p1858_p3, %p1857_p2 }
  0x81   :  { %p1860_p5 = pnand %p1859_p4, %p1853_p1 }
  0x83   :  { %1863 = shalt.err (!%p1860_p5)
}
  0x84   :  { %83 = dma.hbm_to_vmem [thread:$0]  %s2524_s3, 1024, %s78_s14, [#allocation6], %s2013_s7, %s2013_s7, %s2014_s9  }
  0x85   :  { %s1864_s30 = scalar_lea.hbm %s2494_s12, 1024 }
  0x86   :  { %p1865_p6 = scmp.ne.s32.totalorder %s2494_s12, %s1864_s30  ;;  %p1868_p7 = scmp.lt.u32.totalorder %s1864_s30, %s2494_s12 }
  0x88   :  { %p1870_p8 = pnand %p1868_p7, %p1865_p6 }
  0x8a   :  { %1873 = shalt.err (!%p1870_p8)
}
  0x8b   :  { %s1874_s8 = scalar_lea.vmem %s106_s10, 1024  ;;  %p1879_p10 = scmp.lt.s32.totalorder %s106_s10, %s106_s10 }
  0x8c   :  { %p1875_p9 = scmp.ne.s32.totalorder %s106_s10, %s1874_s8  ;;  %p1880_p11 = scmp.lt.s32.totalorder %s1874_s8, %s1874_s8 }
  0x8e   :  { %p1881_p12 = por %p1880_p11, %p1879_p10 }
  0x90   :  { %p1882_p13 = pnand %p1881_p12, %p1875_p9 }
  0x92   :  { %1885 = shalt.err (!%p1882_p13)
}
  0x93   :  { %111 = dma.hbm_to_vmem [thread:$0]  %s2494_s12, 1024, %s106_s10, [#allocation9], %s2013_s7, %s2013_s7, %s2014_s9  }
  0x94   :  { %s2019_s27 = smov [#allocation13]   ;;  %s2020_s6 = smov [#allocation16]  }
  0x95   :  { %s135_s4 = sshll.u32 %s2019_s27, 4  ;;  %s163_s0 = sshll.u32 %s2020_s6, 4  ;;  %s136_s4 = int_to_ptr.vmem [resolvable:$true] %s135_s4  ;;  %s164_s0 = int_to_ptr.vmem [resolvable:$true] %s163_s0 }
  0x96   :  { %s1886_s28 = scalar_lea.hbm %s2499_s17, 1024 }
  0x97   :  { %p1887_p0 = scmp.ne.s32.totalorder %s2499_s17, %s1886_s28  ;;  %p1890_p1 = scmp.lt.u32.totalorder %s1886_s28, %s2499_s17 }
  0x99   :  { %p1892_p2 = pnand %p1890_p1, %p1887_p0 }
  0x9b   :  { %1895 = shalt.err (!%p1892_p2)
}
  0x9c   :  { %s1896_s12 = scalar_lea.vmem %s136_s4, 1024  ;;  %p1901_p4 = scmp.lt.s32.totalorder %s136_s4, %s136_s4 }
  0x9d   :  { %p1897_p3 = scmp.ne.s32.totalorder %s136_s4, %s1896_s12  ;;  %p1902_p5 = scmp.lt.s32.totalorder %s1896_s12, %s1896_s12 }
  0x9f   :  { %p1903_p6 = por %p1902_p5, %p1901_p4 }
  0xa1   :  { %p1904_p7 = pnand %p1903_p6, %p1897_p3 }
  0xa3   :  { %1907 = shalt.err (!%p1904_p7)
}
  0xa4   :  { %141 = dma.hbm_to_vmem [thread:$0]  %s2499_s17, 1024, %s136_s4, [#allocation12], %s2013_s7, %s2013_s7, %s2014_s9  }
  0xa5   :  { %s1908_s3 = scalar_lea.hbm %s2503_s21, 1024 }
  0xa6   :  { %p1909_p8 = scmp.ne.s32.totalorder %s2503_s21, %s1908_s3  ;;  %p1912_p9 = scmp.lt.u32.totalorder %s1908_s3, %s2503_s21 }
  0xa8   :  { %p1914_p10 = pnand %p1912_p9, %p1909_p8 }
  0xaa   :  { %1917 = shalt.err (!%p1914_p10)
}
  0xab   :  { %s1918_s28 = scalar_lea.vmem %s164_s0, 1024  ;;  %p1923_p12 = scmp.lt.s32.totalorder %s164_s0, %s164_s0 }
  0xac   :  { %p1919_p11 = scmp.ne.s32.totalorder %s164_s0, %s1918_s28  ;;  %p1924_p13 = scmp.lt.s32.totalorder %s1918_s28, %s1918_s28 }
  0xae   :  { %p1925_p0 = por %p1924_p13, %p1923_p12 }
  0xb0   :  { %p1926_p1 = pnand %p1925_p0, %p1919_p11 }
  0xb2   :  { %1929 = shalt.err (!%p1926_p1)
}
  0xb3   :  { %169 = dma.hbm_to_vmem [thread:$0]  %s2503_s21, 1024, %s164_s0, [#allocation15], %s2013_s7, %s2013_s7, %s2014_s9  }
  0xb4   :  { %1996 = dma.done.wait [#allocation3], 1024  }
  0xb5   :  { %1997 = vsyncadd [#allocation3], 4294966272 }
  0xb6   :  { %1998 = dma.done.wait [#allocation6], 1040  }
  0xb7   :  { %1999 = vsyncadd [#allocation6], 4294966256 }
  0xb8   :  { %2000 = dma.done.wait [#allocation9], 2048  }
  0xb9   :  { %2001 = vsyncadd [#allocation9], 4294965248 }
  0xba   :  { %2002 = dma.done.wait [#allocation12], 2048  }
  0xbb   :  { %2003 = vsyncadd [#allocation12], 4294965248 }
  0xbc   :  { %2004 = dma.done.wait [#allocation15], 2048  }
  0xbd   :  { %2005 = vsyncadd [#allocation15], 4294965248  ;;  %v2021_v0 = vmov 0.0   ;;  %vm2022_vm0 = vmmov 0   ;;  %v2023_v1 = vmov 0   ;;  %v1656_v2 = vld [vmem:[#allocation2] sm:$0xff]  }
  0xbe   :  { %1458 = vmatprep.subr.bf16.mxu0 %v2021_v0  ;;  %1474 = vmatprep.mubr.msk.bf16.mxu0 %vm2022_vm0, %v2021_v0  ;;  %v1657_v3 = vld [vmem:[#allocation2 + $0x8] sm:$0xff]   ;;  %v1658_v4 = vld [vmem:[#allocation2 + $0x10] sm:$0xff]   ;;  %s2525_s9 = sld [smem:[#allocation29_spill]]  ;;  %s2526_s29 = sld [smem:[#allocation34_spill]]  ;;  %v1659_v7 = vld [vmem:[#allocation2 + $0x18] sm:$0xff]  }
  0xbf   :  { %1655 = vset.pattern.permute.xlu0 %v2023_v1  ;;  %1478 = vmatprep.subr.bf16.mxu1 %v2021_v0  ;;  %v1660_v9 = vld [vmem:[#allocation2 + $0x20] sm:$0xff]   ;;  %v1661_v11 = vld [vmem:[#allocation2 + $0x28] sm:$0xff]   ;;  %v1662_v13 = vld [vmem:[#allocation2 + $0x30] sm:$0xff]   ;;  %s2527_s19 = sld [smem:[#allocation28_spill]]  ;;  %s2528_s30 = sld [smem:[#allocation32_spill]] }
  0xc0   :  { %1494 = vmatprep.mubr.msk.bf16.mxu1 %vm2022_vm0, %v2021_v0  ;;  %1459 = vmatpush3.bf16.msra.mxu0 %v1656_v2  ;;  %v1663_v15 = vld [vmem:[#allocation2 + $0x38] sm:$0xff]   ;;  %v1672_v21 = vld [vmem:[#allocation7] sm:$0xff]   ;;  %v1673_v22 = vld [vmem:[#allocation7 + $0x8] sm:$0xff]   ;;  %s2529_s26 = sld [smem:[#allocation35_spill]]  ;;  %s2530_s1 = sld [smem:[#allocation37_spill]] }
  0xc1   :  { %1460 = vmatprep.subr.bf16.mxu0 %v2021_v0  ;;  %v1674_v23 = vld [vmem:[#allocation7 + $0x10] sm:$0xff]   ;;  %v1675_v24 = vld [vmem:[#allocation7 + $0x18] sm:$0xff]   ;;  %v1676_v25 = vld [vmem:[#allocation7 + $0x20] sm:$0xff]  }
  0xc2   :  { %v1677_v26 = vld [vmem:[#allocation7 + $0x28] sm:$0xff]   ;;  %v1678_v27 = vld [vmem:[#allocation7 + $0x30] sm:$0xff]   ;;  %v1302_v32 = vld [vmem:[#allocation5] ss:$0 sm:$0xff] }
  0xc3   :  { %v1679_v39 = vld [vmem:[#allocation7 + $0x38] sm:$0xff]   ;;  %v1680_v40 = vld [vmem:[#allocation8] sm:$0xff]   ;;  %v1682_v41 = vld [vmem:[#allocation8 + $0x8] sm:$0xff]  }
  0xc4   :  { %1461 = vmatpush3.bf16.msra.mxu0 %v1657_v3  ;;  %v201_v5 = vld [vmem:[%s2525_s9] sm:$0xff]  ;;  %v1665_v8 = vld [vmem:[%s2526_s29 + $0x8] sm:$0xff]   ;;  %v1666_v10 = vld [vmem:[%s2526_s29 + $0x10] sm:$0xff]  }
  0xc5   :  { %1462 = vmatprep.subr.bf16.mxu0 %v2021_v0  ;;  %223 = vperm.xlu0 %1655, %v201_v5   ;;  %v1664_v6 = vld [vmem:[%s2526_s29] sm:$0xff]   ;;  %v1667_v12 = vld [vmem:[%s2526_s29 + $0x18] sm:$0xff]   ;;  %v1669_v17 = vld [vmem:[%s2526_s29 + $0x28] sm:$0xff]  }
  0xc6   :  { %1479 = vmatpush3.bf16.msra.mxu1 %v1664_v6  ;;  %v1668_v14 = vld [vmem:[%s2526_s29 + $0x20] sm:$0xff]   ;;  %v1670_v19 = vld [vmem:[%s2526_s29 + $0x30] sm:$0xff]   ;;  %v1671_v20 = vld [vmem:[%s2526_s29 + $0x38] sm:$0xff]  }
  0xc7   :  { %1480 = vmatprep.subr.bf16.mxu1 %v2021_v0  ;;  %v200_v16 = vld [vmem:[%s2527_s19] sm:$0xff]  ;;  %v1681_v47 = vld [vmem:[#allocation10] sm:$0xff]   ;;  %v1686_v53 = vld [vmem:[#allocation8 + $0x18] sm:$0xff]   ;;  %s2531_s19 = sld [smem:[#allocation30_spill]] }
  0xc8   :  { %1463 = vmatpush3.bf16.msra.mxu0 %v1658_v4  ;;  %v203_v18 = vpack.c.bf16 %v200_v16, %v200_v16  ;;  %v1293_v28 = vld [vmem:[%s2528_s30] ss:$0 sm:$0xff]  ;;  %v1684_v51 = vld [vmem:[#allocation8 + $0x10] sm:$0xff]   ;;  %v1687_v54 = vld [vmem:[#allocation10 + $0x18] sm:$0xff]  }
  0xc9   :  { %1464 = vmatprep.subr.bf16.mxu0 %v2021_v0  ;;  %v1303_v42 = vld [vmem:[%s2529_s26] ss:$0 sm:$0xff]  ;;  %v1685_v52 = vld [vmem:[#allocation10 + $0x10] sm:$0xff]   ;;  %v1688_v55 = vld [vmem:[#allocation8 + $0x20] sm:$0xff]  }
  0xca   :  { %1481 = vmatpush3.bf16.msra.mxu1 %v1665_v8  ;;  %v1683_v50 = vld [vmem:[#allocation10 + $0x8] sm:$0xff]   ;;  %v1689_v56 = vld [vmem:[#allocation10 + $0x20] sm:$0xff]   ;;  %v1692_v59 = vld [vmem:[#allocation8 + $0x30] sm:$0xff]  }
  0xcb   :  { %1482 = vmatprep.subr.bf16.mxu1 %v2021_v0  ;;  %v1690_v57 = vld [vmem:[#allocation8 + $0x28] sm:$0xff]   ;;  %v1693_v60 = vld [vmem:[#allocation10 + $0x30] sm:$0xff]   ;;  %v1694_v61 = vld [vmem:[#allocation8 + $0x38] sm:$0xff]  }
  0xcc   :  { %1465 = vmatpush3.bf16.msra.mxu0 %v1659_v7  ;;  %v1691_v58 = vld [vmem:[#allocation10 + $0x28] sm:$0xff]   ;;  %v1695_v62 = vld [vmem:[#allocation10 + $0x38] sm:$0xff]   ;;  %v1700_v16 = vld [vmem:[#allocation11 + $0x20] sm:$0xff]  }
  0xcd   :  { %1466 = vmatprep.subr.bf16.mxu0 %v2021_v0  ;;  %v1312_v63 = vld [vmem:[%s2530_s1] ss:$0 sm:$0xff] }
  0xce   :  { %1483 = vmatpush3.bf16.msra.mxu1 %v1666_v10 }
  0xcf   :  { %1484 = vmatprep.subr.bf16.mxu1 %v2021_v0 }
  0xd0   :  { %1467 = vmatpush3.bf16.msra.mxu0 %v1660_v9 }
  0xd1   :  { %1468 = vmatprep.subr.bf16.mxu0 %v2021_v0 }
  0xd2   :  { %1485 = vmatpush3.bf16.msra.mxu1 %v1667_v12 }
  0xd3   :  { %1486 = vmatprep.subr.bf16.mxu1 %v2021_v0 }
  0xd4   :  { %1469 = vmatpush3.bf16.msra.mxu0 %v1661_v11  ;;  %v1696_v11 = vld [vmem:[#allocation11] sm:$0xff]  }
  0xd5   :  { %1470 = vmatprep.subr.bf16.mxu0 %v2021_v0 }
  0xd6   :  { %1487 = vmatpush3.bf16.msra.mxu1 %v1668_v14  ;;  %v1698_v14 = vld [vmem:[#allocation11 + $0x10] sm:$0xff]  }
  0xd7   :  { %1488 = vmatprep.subr.bf16.mxu1 %v2021_v0 }
  0xd8   :  { %1471 = vmatpush3.bf16.msra.mxu0 %v1662_v13  ;;  %v1697_v13 = vld [vmem:[#allocation11 + $0x8] sm:$0xff]  }
  0xd9   :  { %1472 = vmatprep.subr.bf16.mxu0 %v2021_v0 }
  0xda   :  { %1489 = vmatpush3.bf16.msra.mxu1 %v1669_v17  ;;  %v1701_v17 = vld [vmem:[#allocation11 + $0x28] sm:$0xff]  }
  0xdb   :  { %1490 = vmatprep.subr.bf16.mxu1 %v2021_v0 }
  0xdc   :  { %1473 = vmatpush3.bf16.msra.mxu0 %v1663_v15  ;;  %v1699_v15 = vld [vmem:[#allocation11 + $0x18] sm:$0xff]  }
  0xdd   :  { %1498 = vmatprep.subr.bf16.mxu0 %v2021_v0 }
  0xde   :  { %1491 = vmatpush3.bf16.msra.mxu1 %v1670_v19  ;;  %v1703_v19 = vld [vmem:[#allocation11 + $0x38] sm:$0xff]  }
  0xdf   :  { %1475 = vmatmul.mubr.bf16.vlgmr.msra.gmra.mrb[0].mxu0 %v203_v18  ;;  %1492 = vmatprep.subr.bf16.mxu1 %v2021_v0  ;;  %v1702_v18 = vld [vmem:[#allocation11 + $0x30] sm:$0xff]  }
  0xe0   :  { %1514 = vmatprep.mubr.msk.bf16.mxu0 %vm2022_vm0, %v2021_v0  ;;  %1499 = vmatpush3.bf16.msra.mxu0 %v1672_v21  ;;  %v1705_v21 = vld [vmem:[#allocation13 + $0x8] sm:$0xff]  }
  0xe1   :  { %1500 = vmatprep.subr.bf16.mxu0 %v2021_v0 }
  0xe2   :  { %1493 = vmatpush3.bf16.msra.mxu1 %v1671_v20  ;;  %v1704_v20 = vld [vmem:[#allocation13] sm:$0xff]  }
  0xe3   :  { %1518 = vmatprep.subr.bf16.mxu1 %v2021_v0 }
  0xe4   :  { %1501 = vmatpush3.bf16.msra.mxu0 %v1673_v22  ;;  %v1706_v22 = vld [vmem:[#allocation13 + $0x10] sm:$0xff]  }
  0xe5   :  { %1502 = vmatprep.subr.bf16.mxu0 %v2021_v0 }
  0xe8   :  { %1503 = vmatpush3.bf16.msra.mxu0 %v1674_v23  ;;  %v1707_v23 = vld [vmem:[#allocation13 + $0x18] sm:$0xff]  }
  0xe9   :  { %1504 = vmatprep.subr.bf16.mxu0 %v2021_v0 }
  0xec   :  { %1505 = vmatpush3.bf16.msra.mxu0 %v1675_v24  ;;  %v1708_v24 = vld [vmem:[#allocation13 + $0x20] sm:$0xff]  }
  0xed   :  { %1506 = vmatprep.subr.bf16.mxu0 %v2021_v0 }
  0xf0   :  { %1507 = vmatpush3.bf16.msra.mxu0 %v1676_v25  ;;  %v1709_v25 = vld [vmem:[#allocation13 + $0x28] sm:$0xff]  }
  0xf1   :  { %1508 = vmatprep.subr.bf16.mxu0 %v2021_v0 }
  0xf4   :  { %1509 = vmatpush3.bf16.msra.mxu0 %v1677_v26  ;;  %v1322_v26 = vld [vmem:[%s2493_s11] ss:$0 sm:$0xff] }
  0xf5   :  { %1510 = vmatprep.subr.bf16.mxu0 %v2021_v0 }
  0xf8   :  { %1511 = vmatpush3.bf16.msra.mxu0 %v1678_v27  ;;  %v1331_v27 = vld [vmem:[%s2495_s13] ss:$0 sm:$0xff] }
  0xf9   :  { %1512 = vmatprep.subr.bf16.mxu0 %v2021_v0 }
  0xfc   :  { %1513 = vmatpush3.bf16.msra.mxu0 %v1679_v39 }
  0xfd   :  { %1538 = vmatprep.subr.bf16.mxu0 %v2021_v0 }
 0x144   :  { %v2353_v29 = vpop.permute.xlu0 %223 }
 0x145   :  { %v232_v30 = vmul.f32 %v1293_v28, %v2353_v29 }
 0x1b2   :  { %v315_v31 = vpop.f32.mrb[0].mxu0 }
 0x1b3   :  { %v316_v33 = vadd.f32 %v315_v31, %v232_v30  ;;  %v1476_v34 = vpop.f32.mrb[1].mxu0 }
 0x1b4   :  { %v318_v35 = vpop.f32.mrb[2].mxu0 }
 0x1b5   :  { %v328_v36 = vadd.f32 %v1302_v32, %v316_v33  ;;  %v1477_v37 = vpop.f32.mrb[3].mxu0 }
 0x1b7   :  { %v329_v38 = vpack.c.bf16 %v328_v36, %v328_v36 }
 0x1b9   :  { %1495 = vmatmul.mubr.bf16.vlgmr.msra.gmra.mrb[0].mxu1 %v329_v38 }
 0x1ba   :  { %1534 = vmatprep.mubr.msk.bf16.mxu1 %vm2022_vm0, %v2021_v0  ;;  %1519 = vmatpush3.bf16.msra.mxu1 %v1680_v40 }
 0x1bb   :  { %1520 = vmatprep.subr.bf16.mxu1 %v2021_v0 }
 0x1be   :  { %1521 = vmatpush3.bf16.msra.mxu1 %v1682_v41  ;;  %v202_v41 = vld [vmem:[%s2531_s19] sm:$0xff] }
 0x1bf   :  { %1522 = vmatprep.subr.bf16.mxu1 %v2021_v0 }
 0x1c2   :  { %1523 = vmatpush3.bf16.msra.mxu1 %v1684_v51  ;;  %v1715_v51 = vld [vmem:[#allocation14 + $0x18] sm:$0xff]  }
 0x1c3   :  { %1524 = vmatprep.subr.bf16.mxu1 %v2021_v0 }
 0x1c6   :  { %1525 = vmatpush3.bf16.msra.mxu1 %v1686_v53  ;;  %v1717_v53 = vld [vmem:[#allocation14 + $0x28] sm:$0xff]  }
 0x1c7   :  { %1526 = vmatprep.subr.bf16.mxu1 %v2021_v0 }
 0x1ca   :  { %1527 = vmatpush3.bf16.msra.mxu1 %v1688_v55  ;;  %v1340_v55 = vld [vmem:[%s2497_s15] ss:$0 sm:$0xff] }
 0x1cb   :  { %1528 = vmatprep.subr.bf16.mxu1 %v2021_v0 }
 0x1ce   :  { %1529 = vmatpush3.bf16.msra.mxu1 %v1690_v57 }
 0x1cf   :  { %1530 = vmatprep.subr.bf16.mxu1 %v2021_v0 }
 0x1d2   :  { %1531 = vmatpush3.bf16.msra.mxu1 %v1692_v59 }
 0x1d3   :  { %1532 = vmatprep.subr.bf16.mxu1 %v2021_v0 }
 0x1d6   :  { %1533 = vmatpush3.bf16.msra.mxu1 %v1694_v61 }
 0x1d7   :  { %1558 = vmatprep.subr.bf16.mxu1 %v2021_v0 }
 0x28c   :  { %v435_v43 = vpop.f32.mrb[0].mxu1 }
 0x28d   :  { %v436_v44 = vadd.f32 %v1303_v42, %v435_v43  ;;  %v1496_v45 = vpop.f32.mrb[1].mxu1 }
 0x28e   :  { %v438_v46 = vpop.f32.mrb[2].mxu1 }
 0x28f   :  { %v441_v48 = vpack.c.bf16 %v436_v44, %v436_v44  ;;  %v1497_v49 = vpop.f32.mrb[3].mxu1  ;;  %v1710_v46 = vld [vmem:[#allocation13 + $0x30] sm:$0xff]  }
 0x290   :  { %v1713_v49 = vld [vmem:[#allocation14 + $0x8] sm:$0xff]  }
 0x291   :  { %1515 = vmatmul.mubr.bf16.vlgmr.msra.gmra.mrb[4].mxu0 %v441_v48  ;;  %v1712_v48 = vld [vmem:[#allocation14] sm:$0xff]  }
 0x292   :  { %1539 = vmatpush3.bf16.msra.mxu0 %v1681_v47  ;;  %1554 = vmatprep.mubr.msk.bf16.mxu0 %vm2022_vm0, %v2021_v0  ;;  %v1711_v47 = vld [vmem:[#allocation13 + $0x38] sm:$0xff]  }
 0x293   :  { %1540 = vmatprep.subr.bf16.mxu0 %v2021_v0 }
 0x296   :  { %1541 = vmatpush3.bf16.msra.mxu0 %v1683_v50  ;;  %v1714_v50 = vld [vmem:[#allocation14 + $0x10] sm:$0xff]  }
 0x297   :  { %1542 = vmatprep.subr.bf16.mxu0 %v2021_v0 }
 0x29a   :  { %1543 = vmatpush3.bf16.msra.mxu0 %v1685_v52  ;;  %v1716_v52 = vld [vmem:[#allocation14 + $0x20] sm:$0xff]  }
 0x29b   :  { %1544 = vmatprep.subr.bf16.mxu0 %v2021_v0 }
 0x29e   :  { %1545 = vmatpush3.bf16.msra.mxu0 %v1687_v54  ;;  %v1718_v54 = vld [vmem:[#allocation14 + $0x30] sm:$0xff]  }
 0x29f   :  { %1546 = vmatprep.subr.bf16.mxu0 %v2021_v0 }
 0x2a2   :  { %1547 = vmatpush3.bf16.msra.mxu0 %v1689_v56  ;;  %v813_v56 = vmul.f32 %v1340_v55, %v2353_v29  ;;  %v1721_v29 = vld [vmem:[#allocation16 + $0x8] sm:$0xff]  }
 0x2a3   :  { %1548 = vmatprep.subr.bf16.mxu0 %v2021_v0 }
 0x2a6   :  { %1549 = vmatpush3.bf16.msra.mxu0 %v1691_v58  ;;  %v1349_v58 = vld [vmem:[%s2498_s16] ss:$0 sm:$0xff] }
 0x2a7   :  { %1550 = vmatprep.subr.bf16.mxu0 %v2021_v0 }
 0x2aa   :  { %1551 = vmatpush3.bf16.msra.mxu0 %v1693_v60 }
 0x2ab   :  { %1552 = vmatprep.subr.bf16.mxu0 %v2021_v0 }
 0x2ae   :  { %1553 = vmatpush3.bf16.msra.mxu0 %v1695_v62 }
 0x2af   :  { %1578 = vmatprep.subr.bf16.mxu0 %v2021_v0 }
 0x364   :  { %v547_v1 = vpop.f32.mrb[4].mxu0 }
 0x365   :  { %v548_v2 = vadd.f32 %v1312_v63, %v547_v1  ;;  %v1516_v3 = vpop.f32.mrb[5].mxu0 }
 0x366   :  { %v550_v4 = vpop.f32.mrb[6].mxu0  ;;  %v1720_v3 = vld [vmem:[#allocation16] sm:$0xff]  }
 0x367   :  { %v554_v5 = vmin.f32 %v548_v2, 0.0  ;;  %v1517_v6 = vpop.f32.mrb[7].mxu0  ;;  %vm553_vm1 = vcmp.gt.f32.partialorder %v548_v2, 0.0  ;;  %v1722_v4 = vld [vmem:[#allocation16 + $0x10] sm:$0xff]  }
 0x368   :  { %v1724_v6 = vld [vmem:[#allocation16 + $0x20] sm:$0xff]  }
 0x369   :  { %v555_v7 = vmul.f32 1.442695, %v554_v5  ;;  %v1723_v5 = vld [vmem:[#allocation16 + $0x18] sm:$0xff]  }
 0x36b   :  { %1728 = vpow2.f32 %v555_v7  ;;  %v1725_v7 = vld [vmem:[#allocation16 + $0x28] sm:$0xff]  }
 0x375   :  { %v1729_v8 = vpop.eup %1728 }
 0x376   :  { %v1321_v9 = vadd.f32 -1.0, %v1729_v8  ;;  %v1726_v8 = vld [vmem:[#allocation16 + $0x30] sm:$0xff]  }
 0x378   :  { %v558_v10 = vsel %vm553_vm1, %v548_v2, %v1321_v9  ;;  %v1719_v2 = vld [vmem:[#allocation14 + $0x38] sm:$0xff]   ;;  %v1350_v9 = vld [vmem:[%s2500_s18] ss:$0 sm:$0xff]  ;;  %s2024_s18 = smov [#allocation18]  }
 0x379   :  { %v559_v12 = vpack.c.bf16 %v558_v10, %v558_v10  ;;  %s1263_s7 = sshll.u32 %s2024_s18, 4  ;;  %s1264_s7 = int_to_ptr.vmem [resolvable:$true] %s1263_s7 }
 0x37a   :  { %s1930_s9 = scalar_lea.vmem %s1264_s7, 128  ;;  %p1935_p3 = scmp.lt.s32.totalorder %s1264_s7, %s1264_s7 }
 0x37b   :  { %1535 = vmatmul.mubr.bf16.vlgmr.msra.gmra.mrb[4].mxu1 %v559_v12  ;;  %1555 = vmatmul.mubr.bf16.vlgmr.msra.gmra.mrb[8].mxu0 %v559_v12  ;;  %p1931_p2 = scmp.ne.s32.totalorder %s1264_s7, %s1930_s9  ;;  %p1936_p4 = scmp.lt.s32.totalorder %s1930_s9, %s1930_s9 }
 0x37c   :  { %1559 = vmatpush3.bf16.msra.mxu1 %v1696_v11  ;;  %1574 = vmatprep.mubr.msk.bf16.mxu1 %vm2022_vm0, %v2021_v0 }
 0x37d   :  { %1560 = vmatprep.subr.bf16.mxu1 %v2021_v0  ;;  %1594 = vmatprep.mubr.msk.bf16.mxu0 %vm2022_vm0, %v2021_v0  ;;  %p1937_p5 = por %p1936_p4, %p1935_p3 }
 0x37e   :  { %1579 = vmatpush3.bf16.msra.mxu0 %v1704_v20 }
 0x37f   :  { %1580 = vmatprep.subr.bf16.mxu0 %v2021_v0  ;;  %p1938_p6 = pnand %p1937_p5, %p1931_p2 }
 0x380   :  { %1561 = vmatpush3.bf16.msra.mxu1 %v1697_v13 }
 0x381   :  { %1562 = vmatprep.subr.bf16.mxu1 %v2021_v0 }
 0x382   :  { %1581 = vmatpush3.bf16.msra.mxu0 %v1705_v21 }
 0x383   :  { %1582 = vmatprep.subr.bf16.mxu0 %v2021_v0 }
 0x384   :  { %1563 = vmatpush3.bf16.msra.mxu1 %v1698_v14 }
 0x385   :  { %1564 = vmatprep.subr.bf16.mxu1 %v2021_v0 }
 0x386   :  { %1583 = vmatpush3.bf16.msra.mxu0 %v1706_v22 }
 0x387   :  { %1584 = vmatprep.subr.bf16.mxu0 %v2021_v0 }
 0x388   :  { %1565 = vmatpush3.bf16.msra.mxu1 %v1699_v15 }
 0x389   :  { %1566 = vmatprep.subr.bf16.mxu1 %v2021_v0 }
 0x38a   :  { %1585 = vmatpush3.bf16.msra.mxu0 %v1707_v23 }
 0x38b   :  { %1586 = vmatprep.subr.bf16.mxu0 %v2021_v0 }
 0x38c   :  { %1567 = vmatpush3.bf16.msra.mxu1 %v1700_v16  ;;  %v1727_v16 = vld [vmem:[#allocation16 + $0x38] sm:$0xff]  }
 0x38d   :  { %1568 = vmatprep.subr.bf16.mxu1 %v2021_v0 }
 0x38e   :  { %1587 = vmatpush3.bf16.msra.mxu0 %v1708_v24 }
 0x38f   :  { %1588 = vmatprep.subr.bf16.mxu0 %v2021_v0 }
 0x390   :  { %1569 = vmatpush3.bf16.msra.mxu1 %v1701_v17  ;;  %v1359_v17 = vld [vmem:[%s2502_s20] ss:$0 sm:$0xff] }
 0x391   :  { %1570 = vmatprep.subr.bf16.mxu1 %v2021_v0 }
 0x392   :  { %1589 = vmatpush3.bf16.msra.mxu0 %v1709_v25 }
 0x393   :  { %1590 = vmatprep.subr.bf16.mxu0 %v2021_v0 }
 0x394   :  { %1571 = vmatpush3.bf16.msra.mxu1 %v1702_v18 }
 0x395   :  { %1572 = vmatprep.subr.bf16.mxu1 %v2021_v0 }
 0x396   :  { %1591 = vmatpush3.bf16.msra.mxu0 %v1710_v46 }
 0x397   :  { %1592 = vmatprep.subr.bf16.mxu0 %v2021_v0 }
 0x398   :  { %1573 = vmatpush3.bf16.msra.mxu1 %v1703_v19 }
 0x399   :  { %1598 = vmatprep.subr.bf16.mxu1 %v2021_v0 }
 0x39a   :  { %1593 = vmatpush3.bf16.msra.mxu0 %v1711_v47 }
 0x39b   :  { %1618 = vmatprep.subr.bf16.mxu0 %v2021_v0 }
 0x44e   :  { %v665_v28 = vpop.f32.mrb[4].mxu1  ;;  %v776_v30 = vpop.f32.mrb[8].mxu0 }
 0x44f   :  { %v666_v31 = vadd.f32 %v1322_v26, %v665_v28  ;;  %v777_v32 = vadd.f32 %v1331_v27, %v776_v30  ;;  %v1536_v33 = vpop.f32.mrb[5].mxu1  ;;  %v1556_v34 = vpop.f32.mrb[9].mxu0 }
 0x450   :  { %v668_v35 = vpop.f32.mrb[6].mxu1  ;;  %v779_v36 = vpop.f32.mrb[10].mxu0 }
 0x451   :  { %782 = vst [vmem:[#allocation18] sm:$0xff] %v666_v31  ;;  %783 = vst [vmem:[#allocation20] sm:$0xff] %v777_v32  ;;  %v784_v37 = vmul.f32 0.5, %v777_v32  ;;  %v1537_v38 = vpop.f32.mrb[7].mxu1  ;;  %v1557_v39 = vpop.f32.mrb[11].mxu0 }
 0x453   :  { %v785_v40 = vmul.f32 1.442695, %v784_v37 }
 0x455   :  { %1730 = vpow2.f32 %v785_v40 }
 0x45f   :  { %v1731_v42 = vpop.eup %1730 }
 0x460   :  { %v787_v43 = vmul.f32 %v1731_v42, %v202_v41 }
 0x462   :  { %v788_v44 = vadd.f32 %v787_v43, %v666_v31 }
 0x464   :  { %v789_v45 = vpack.c.bf16 %v788_v44, %v788_v44 }
 0x466   :  { %1575 = vmatmul.mubr.bf16.vlgmr.msra.gmra.mrb[8].mxu1 %v789_v45 }
 0x467   :  { %1614 = vmatprep.mubr.msk.bf16.mxu1 %vm2022_vm0, %v2021_v0  ;;  %1599 = vmatpush3.bf16.msra.mxu1 %v1712_v48 }
 0x468   :  { %1600 = vmatprep.subr.bf16.mxu1 %v2021_v0 }
 0x46b   :  { %1601 = vmatpush3.bf16.msra.mxu1 %v1713_v49 }
 0x46c   :  { %1602 = vmatprep.subr.bf16.mxu1 %v2021_v0 }
 0x46f   :  { %1603 = vmatpush3.bf16.msra.mxu1 %v1714_v50 }
 0x470   :  { %1604 = vmatprep.subr.bf16.mxu1 %v2021_v0 }
 0x473   :  { %1605 = vmatpush3.bf16.msra.mxu1 %v1715_v51 }
 0x474   :  { %1606 = vmatprep.subr.bf16.mxu1 %v2021_v0 }
 0x477   :  { %1607 = vmatpush3.bf16.msra.mxu1 %v1716_v52 }
 0x478   :  { %1608 = vmatprep.subr.bf16.mxu1 %v2021_v0 }
 0x47b   :  { %1609 = vmatpush3.bf16.msra.mxu1 %v1717_v53 }
 0x47c   :  { %1610 = vmatprep.subr.bf16.mxu1 %v2021_v0 }
 0x47f   :  { %1611 = vmatpush3.bf16.msra.mxu1 %v1718_v54 }
 0x480   :  { %1612 = vmatprep.subr.bf16.mxu1 %v2021_v0 }
 0x483   :  { %1613 = vmatpush3.bf16.msra.mxu1 %v1719_v2 }
 0x539   :  { %v896_v57 = vpop.f32.mrb[8].mxu1 }
 0x53a   :  { %v897_v59 = vadd.f32 %v896_v57, %v813_v56  ;;  %v1576_v60 = vpop.f32.mrb[9].mxu1 }
 0x53b   :  { %v899_v61 = vpop.f32.mrb[10].mxu1 }
 0x53c   :  { %v909_v62 = vadd.f32 %v1349_v58, %v897_v59  ;;  %v1577_v63 = vpop.f32.mrb[11].mxu1 }
 0x53e   :  { %v910_v1 = vpack.c.bf16 %v909_v62, %v909_v62 }
 0x540   :  { %1595 = vmatmul.mubr.bf16.vlgmr.msra.gmra.mrb[12].mxu0 %v910_v1 }
 0x541   :  { %1634 = vmatprep.mubr.msk.bf16.mxu0 %vm2022_vm0, %v2021_v0  ;;  %1619 = vmatpush3.bf16.msra.mxu0 %v1720_v3 }
 0x542   :  { %1620 = vmatprep.subr.bf16.mxu0 %v2021_v0 }
 0x545   :  { %1621 = vmatpush3.bf16.msra.mxu0 %v1721_v29 }
 0x546   :  { %1622 = vmatprep.subr.bf16.mxu0 %v2021_v0 }
 0x549   :  { %1623 = vmatpush3.bf16.msra.mxu0 %v1722_v4 }
 0x54a   :  { %1624 = vmatprep.subr.bf16.mxu0 %v2021_v0 }
 0x54d   :  { %1625 = vmatpush3.bf16.msra.mxu0 %v1723_v5 }
 0x54e   :  { %1626 = vmatprep.subr.bf16.mxu0 %v2021_v0 }
 0x551   :  { %1627 = vmatpush3.bf16.msra.mxu0 %v1724_v6 }
 0x552   :  { %1628 = vmatprep.subr.bf16.mxu0 %v2021_v0 }
 0x555   :  { %1629 = vmatpush3.bf16.msra.mxu0 %v1725_v7 }
 0x556   :  { %1630 = vmatprep.subr.bf16.mxu0 %v2021_v0 }
 0x559   :  { %1631 = vmatpush3.bf16.msra.mxu0 %v1726_v8 }
 0x55a   :  { %1632 = vmatprep.subr.bf16.mxu0 %v2021_v0 }
 0x55d   :  { %1633 = vmatpush3.bf16.msra.mxu0 %v1727_v16 }
 0x613   :  { %v1016_v10 = vpop.f32.mrb[12].mxu0 }
 0x614   :  { %v1017_v11 = vadd.f32 %v1350_v9, %v1016_v10  ;;  %v1596_v12 = vpop.f32.mrb[13].mxu0 }
 0x615   :  { %v1019_v13 = vpop.f32.mrb[14].mxu0 }
 0x616   :  { %v1022_v14 = vpack.c.bf16 %v1017_v11, %v1017_v11  ;;  %v1597_v15 = vpop.f32.mrb[15].mxu0 }
 0x618   :  { %1615 = vmatmul.mubr.bf16.vlgmr.msra.gmra.mrb[12].mxu1 %v1022_v14 }
 0x6eb   :  { %v1128_v18 = vpop.f32.mrb[12].mxu1 }
 0x6ec   :  { %v1129_v19 = vadd.f32 %v1359_v17, %v1128_v18  ;;  %v1616_v0 = vpop.f32.mrb[13].mxu1 }
 0x6ed   :  { %v1131_v20 = vpop.f32.mrb[14].mxu1 }
 0x6ee   :  { %v1134_v21 = vpack.c.bf16 %v1129_v19, %v1129_v19  ;;  %v1617_v22 = vpop.f32.mrb[15].mxu1 }
 0x6f0   :  { %1635 = vmatmul.mubr.bf16.vlgmr.msra.gmra.mrb[16].mxu0 %v1134_v21 }
 0x6f1   :  { %1941 = shalt.err (!%p1938_p6)
}
 0x6f2   :  { %s1942_s20 = scalar_lea.hbm %s2506_s24, 128 }
 0x6f3   :  { %p1943_p7 = scmp.ne.s32.totalorder %s2506_s24, %s1942_s20  ;;  %p1946_p8 = scmp.lt.u32.totalorder %s1942_s20, %s2506_s24 }
 0x6f5   :  { %p1948_p9 = pnand %p1946_p8, %p1943_p7 }
 0x6f7   :  { %1951 = shalt.err (!%p1948_p9)
}
 0x6f8   :  { %1266 = dma.vmem_to_hbm [thread:$0]  %s1264_s7, 128, %s2506_s24, [#allocation19]  }
 0x6f9   :  { %s2025_s8 = smov [#allocation20]  }
 0x6fa   :  { %s1273_s14 = sshll.u32 %s2025_s8, 4  ;;  %s1274_s14 = int_to_ptr.vmem [resolvable:$true] %s1273_s14 }
 0x6fb   :  { %s1952_s3 = scalar_lea.vmem %s1274_s14, 128  ;;  %p1957_p11 = scmp.lt.s32.totalorder %s1274_s14, %s1274_s14 }
 0x6fc   :  { %p1953_p10 = scmp.ne.s32.totalorder %s1274_s14, %s1952_s3  ;;  %p1958_p12 = scmp.lt.s32.totalorder %s1952_s3, %s1952_s3 }
 0x6fe   :  { %p1959_p13 = por %p1958_p12, %p1957_p11 }
 0x700   :  { %p1960_p0 = pnand %p1959_p13, %p1953_p10 }
 0x702   :  { %1963 = shalt.err (!%p1960_p0)
}
 0x703   :  { %s1964_s6 = scalar_lea.hbm %s2507_s25, 128 }
 0x704   :  { %p1965_p1 = scmp.ne.s32.totalorder %s2507_s25, %s1964_s6  ;;  %p1968_p2 = scmp.lt.u32.totalorder %s1964_s6, %s2507_s25 }
 0x706   :  { %p1970_p3 = pnand %p1968_p2, %p1965_p1 }
 0x708   :  { %1973 = shalt.err (!%p1970_p3)
}
 0x709   :  { %1276 = dma.vmem_to_hbm [thread:$0]  %s1274_s14, 128, %s2507_s25, [#allocation19]   ;;  %v1368_v23 = vld [vmem:[%s2504_s22] ss:$0 sm:$0xff] }
 0x70a   :  { %s2026_s4 = smov [#allocation17]  }
 0x70b   :  { %s1253_s21 = sshll.u32 %s2026_s4, 4  ;;  %s1254_s21 = int_to_ptr.vmem [resolvable:$true] %s1253_s21 }
 0x70c   :  { %s1974_s18 = scalar_lea.vmem %s1254_s21, 128  ;;  %p1979_p5 = scmp.lt.s32.totalorder %s1254_s21, %s1254_s21 }
 0x70d   :  { %p1975_p4 = scmp.ne.s32.totalorder %s1254_s21, %s1974_s18  ;;  %p1980_p6 = scmp.lt.s32.totalorder %s1974_s18, %s1974_s18 }
 0x70f   :  { %p1981_p7 = por %p1980_p6, %p1979_p5 }
 0x711   :  { %p1982_p8 = pnand %p1981_p7, %p1975_p4 }
 0x7c3   :  { %v1240_v24 = vpop.f32.mrb[16].mxu0 }
 0x7c4   :  { %v1241_v25 = vadd.f32 %v1368_v23, %v1240_v24  ;;  %v1636_v26 = vpop.f32.mrb[17].mxu0 }
 0x7c5   :  { %v1243_v27 = vpop.f32.mrb[18].mxu0 }
 0x7c6   :  { %1246 = vst [vmem:[#allocation17] sm:$0xff] %v1241_v25  ;;  %v1637_v28 = vpop.f32.mrb[19].mxu0 }
 0x7c7   :  { %1985 = shalt.err (!%p1982_p8)
}
 0x7c8   :  { %s1986_s22 = scalar_lea.hbm %s2505_s23, 128 }
 0x7c9   :  { %p1987_p9 = scmp.ne.s32.totalorder %s2505_s23, %s1986_s22  ;;  %p1990_p10 = scmp.lt.u32.totalorder %s1986_s22, %s2505_s23 }
 0x7cb   :  { %p1992_p11 = pnand %p1990_p10, %p1987_p9 }
 0x7cd   :  { %1995 = shalt.err (!%p1992_p11)
}
 0x7ce   :  { %1256 = dma.vmem_to_hbm [thread:$0]  %s1254_s21, 128, %s2505_s23, [#allocation4]  }
 0x7cf   :  { %2006 = dma.done.wait [#allocation4], 128  }
 0x7d0   :  { %2007 = vsyncadd [#allocation4], 4294967168 }
 0x7d1   :  { %2008 = dma.done.wait [#allocation19], 256  }
 0x7d2   :  { %2009 = vsyncadd [#allocation19], 4294967040 }
 0x7d3   :  { %1286 = vsyncpa [#allocation3], 1 }
 0x7d4   :  { %1287 = vsyncpa [#allocation6], 1 }
 0x7d5   :  { %1288 = vsyncpa [#allocation9], 1 }
 0x7d6   :  { %1289 = vsyncpa [#allocation12], 1 }
 0x7d7   :  { %1290 = vsyncpa [#allocation15], 1 }
 0x7d8   :  { %1291 = vsyncpa [#allocation4], 1 }
 0x7d9   :  { %1292 = vsyncpa [#allocation19], 1 }

</bundles_post_ra>
